<compile_context>
chip_gen: v7x
topology: tpu7x:2x2x1
jax: 0.10.0
libtpu: 0.0.40
codegen_flags: <defaults>
</compile_context>

<pallas_src>
import jax
import jax.numpy as jnp
import numpy as np
from jax.experimental import pallas as pl
from jax.experimental.pallas import tpu as pltpu

LANE = 128  # lane width; label dim is padded to this for lane-dense stores


def _choose_b_tile(B, cap=256):
    """Largest multiple-of-8 divisor of B (<= cap) that keeps grid >= 2."""
    upper = min(cap, B // 2)
    for t in range(upper, 7, -1):
        if B % t == 0 and t % 8 == 0:
            return t
    return B  # fall back to a single grid step


# --------------------------------- kernels -----------------------------------
def _rep_aggregate_classify_kernel(reps_ref, w_ref, wc_ref, bc_ref, out_ref):
    """strategies 'average' / 'weightaverage' — one batch tile per grid step.

    reps_ref : (K, Bt, H)    per-doc pooled BERT reps (native layout)
    w_ref    : (K, Bt, 1)    per-doc weights (all-ones => plain 'average')
    wc_ref   : (H, LANE)     classifier weight, pre-transposed, lane-padded
    bc_ref   : (1, LANE)     classifier bias, lane-padded
    out_ref  : (Bt, LANE)    logits; first L lanes valid, rest zero
    """
    reps = reps_ref[...]                                  # (K, Bt, H)
    w = w_ref[...]                                        # (K, Bt, 1)
    # sum_k w_k * rep_k / sum_k w_k  == torch weightaverage (== mean for w=1)
    fused = jnp.sum(reps * w, axis=0) / jnp.sum(w, axis=0)   # (Bt, H)
    out_ref[...] = (
        jnp.dot(fused, wc_ref[...], preferred_element_type=jnp.float32)
        + bc_ref[...]
    )


def _vote_kernel(logits_ref, w_ref, out_ref):
    """strategies 'softvote' / 'weightvote' — one batch tile per grid step.

    logits_ref : (K, Bt, LANE)  per-doc classifier logits, padded lanes = -1e30
    w_ref      : (K, Bt, 1)     per-doc weights (all-ones => 'softvote')
    out_ref    : (Bt, LANE)     log of (weighted-)averaged probabilities
    """
    lg = logits_ref[...]                                  # (K, Bt, LANE) f32
    w = w_ref[...]                                        # (K, Bt, 1)
    m = jnp.max(lg, axis=-1, keepdims=True)
    e = jnp.exp(lg - m)
    p = e / jnp.sum(e, axis=-1, keepdims=True)            # per-doc softmax (f32)
    avg = jnp.sum(p * w, axis=0) / jnp.sum(w, axis=0)     # (Bt, LANE)
    out_ref[...] = jnp.log(avg)


# -------------------------------- wrappers ------------------------------------
def crossenc_average_forward(doc_reps, classifier_w, classifier_b,
                             doc_weights=None, *, b_tile=None):
    """'average' (doc_weights=None) / 'weightaverage' strategies.

    doc_reps     : (K, B, H) per-doc pooled BERT reps
    doc_weights  : (K, B) or None
    classifier_w : (H, L)   nn.Linear weight, pre-transposed to (in, out)
    classifier_b : (L,)
    Returns (None, logits) with logits (B, L), mirroring module.forward.
    """
    K, B, H = doc_reps.shape
    L = classifier_w.shape[1]
    assert L <= LANE
    if b_tile is None:
        b_tile = _choose_b_tile(B)
    assert B % b_tile == 0
    if doc_weights is None:
        doc_weights = jnp.ones((K, B), jnp.float32)

    reps = doc_reps.astype(jnp.float32)                              # (K, B, H)
    w = doc_weights.astype(jnp.float32).reshape(K, B, 1)             # (K, B, 1)
    wc = jnp.zeros((H, LANE), jnp.float32).at[:, :L].set(
        classifier_w.astype(jnp.float32))
    bc = jnp.zeros((1, LANE), jnp.float32).at[:, :L].set(
        classifier_b.astype(jnp.float32).reshape(1, L))

    out = pl.pallas_call(
        _rep_aggregate_classify_kernel,
        out_shape=jax.ShapeDtypeStruct((B, LANE), jnp.float32),
        grid_spec=pltpu.PrefetchScalarGridSpec(
            num_scalar_prefetch=0,
            grid=(B // b_tile,),
            in_specs=[
                pl.BlockSpec((K, b_tile, H), lambda b: (0, b, 0)),
                pl.BlockSpec((K, b_tile, 1), lambda b: (0, b, 0)),
                pl.BlockSpec((H, LANE), lambda b: (0, 0)),
                pl.BlockSpec((1, LANE), lambda b: (0, 0)),
            ],
            out_specs=pl.BlockSpec((b_tile, LANE), lambda b: (b, 0)),
        ),
        compiler_params=pltpu.CompilerParams(
            dimension_semantics=("parallel",)),
    )(reps, w, wc, bc)
    return None, out[:, :L]


def crossenc_vote_forward(doc_logits, doc_weights=None, *, b_tile=None):
    """'softvote' (doc_weights=None) / 'weightvote' strategies.

    doc_logits  : (K, B, L) per-doc classifier logits
    doc_weights : (K, B) or None
    Returns (None, averaged_log_probs) with shape (B, L).
    """
    K, B, L = doc_logits.shape
    assert L <= LANE
    if b_tile is None:
        b_tile = _choose_b_tile(B)
    assert B % b_tile == 0
    if doc_weights is None:
        doc_weights = jnp.ones((K, B), jnp.float32)

    lg = doc_logits.astype(jnp.float32)                               # (K, B, L)
    lg_pad = jnp.pad(lg, ((0, 0), (0, 0), (0, LANE - L)),
                     constant_values=-1e30)                           # (K, B, 128)
    w = doc_weights.astype(jnp.float32).reshape(K, B, 1)              # (K, B, 1)

    out = pl.pallas_call(
        _vote_kernel,
        out_shape=jax.ShapeDtypeStruct((B, LANE), jnp.float32),
        grid_spec=pltpu.PrefetchScalarGridSpec(
            num_scalar_prefetch=0,
            grid=(B // b_tile,),
            in_specs=[
                pl.BlockSpec((K, b_tile, LANE), lambda b: (0, b, 0)),
                pl.BlockSpec((K, b_tile, 1), lambda b: (0, b, 0)),
            ],
            out_specs=pl.BlockSpec((b_tile, LANE), lambda b: (b, 0)),
        ),
        compiler_params=pltpu.CompilerParams(
            dimension_semantics=("parallel",)),
    )(lg_pad, w)
    return None, out[:, :L]


# ---------------------------- pure-JAX references -----------------------------
def reference_average(doc_reps, classifier_w, classifier_b):
    final = jnp.mean(doc_reps, axis=0)                    # (B, H)
    return jnp.dot(final, classifier_w,
                   precision=jax.lax.Precision.HIGHEST) + classifier_b


def reference_weightaverage(doc_reps, doc_weights, classifier_w, classifier_b):
    w = doc_weights[:, :, None]                           # (K, B, 1)
    total = jnp.sum(w, axis=0)                            # (B, 1)
    averaged = jnp.sum((doc_reps * w) / total, axis=0)    # (B, H)
    return jnp.dot(averaged, classifier_w,
                   precision=jax.lax.Precision.HIGHEST) + classifier_b


def reference_softvote(doc_logits):
    probs = jax.nn.softmax(doc_logits, axis=-1)           # (K, B, L)
    return jnp.log(jnp.mean(probs, axis=0))


def reference_weightvote(doc_logits, doc_weights):
    probs = jax.nn.softmax(doc_logits, axis=-1)
    w = doc_weights[:, :, None]
    total = jnp.sum(w, axis=0)
    return jnp.log(jnp.sum(probs * w / total, axis=0))


# ------------------------------------ main ------------------------------------
if __name__ == "__main__":
    key = jax.random.PRNGKey(0)
    k1, k2, k3, k4, k5 = jax.random.split(key, 5)

    # topk retrieved docs K, batch B, BERT hidden H, num_labels L
    K, B, H, L = 4, 64, 128, 2

    doc_reps = jax.random.normal(k1, (K, B, H), jnp.float32)      # pooled reps
    doc_logits = jax.random.normal(k2, (K, B, L), jnp.float32)    # per-doc logits
    doc_weights = jax.random.uniform(k3, (K, B), jnp.float32, 0.1, 1.0)
    classifier_w = 0.05 * jax.random.normal(k4, (H, L), jnp.float32)
    classifier_b = 0.05 * jax.random.normal(k5, (L,), jnp.float32)

    # strategy='average'
    _, avg_logits = crossenc_average_forward(doc_reps, classifier_w, classifier_b)
    # strategy='weightaverage'
    _, wavg_logits = crossenc_average_forward(doc_reps, classifier_w, classifier_b,
                                              doc_weights=doc_weights)
    # strategy='softvote'
    _, sv_logp = crossenc_vote_forward(doc_logits)
    # strategy='weightvote'
    _, wv_logp = crossenc_vote_forward(doc_logits, doc_weights=doc_weights)

    for o in (avg_logits, wavg_logits, sv_logp, wv_logp):
        jax.block_until_ready(o)

    np.testing.assert_allclose(
        np.asarray(avg_logits),
        np.asarray(reference_average(doc_reps, classifier_w, classifier_b)),
        rtol=1e-4, atol=1e-4)
    np.testing.assert_allclose(
        np.asarray(wavg_logits),
        np.asarray(reference_weightaverage(doc_reps, doc_weights,
                                           classifier_w, classifier_b)),
        rtol=1e-4, atol=1e-4)
    np.testing.assert_allclose(
        np.asarray(sv_logp),
        np.asarray(reference_softvote(doc_logits)),
        rtol=1e-4, atol=1e-4)
    np.testing.assert_allclose(
        np.asarray(wv_logp),
        np.asarray(reference_weightvote(doc_logits, doc_weights)),
        rtol=1e-4, atol=1e-4)

    print("KERNEL_OK")
</pallas_src>

<mosaic_0001>
module attributes {stable_mosaic.version = 11 : i64} {
  func.func @_rep_aggregate_classify_kernel(%arg0: i32, %arg1: memref<4x32x128xf32, #tpu.memory_space<vmem>>, %arg2: memref<4x32x1xf32, #tpu.memory_space<vmem>>, %arg3: memref<128x128xf32, #tpu.memory_space<vmem>>, %arg4: memref<1x128xf32, #tpu.memory_space<vmem>>, %arg5: memref<32x128xf32, #tpu.memory_space<vmem>>) attributes {dimension_semantics = [#tpu.dimension_semantics<parallel>], iteration_bounds = array<i64: 2>, scalar_prefetch = 0 : i64, scratch_operands = 0 : i64, tpu.core_type = #tpu.core_type<tc>, window_params = [{transform_indices = @transform_0, window_bounds = array<i64: 4, 32, 128>}, {transform_indices = @transform_1, window_bounds = array<i64: 4, 32, 1>}, {pipeline_mode = #tpu.pipeline_mode<synchronous>, transform_indices = @transform_2, window_bounds = array<i64: 128, 128>}, {pipeline_mode = #tpu.pipeline_mode<synchronous>, transform_indices = @transform_3, window_bounds = array<i64: 1, 128>}, {transform_indices = @transform_4, window_bounds = array<i64: 32, 128>}]} {
    %c0 = arith.constant 0 : index
    %c0_0 = arith.constant 0 : index
    %c0_1 = arith.constant 0 : index
    %0 = vector.load %arg1[%c0, %c0_0, %c0_1] : memref<4x32x128xf32, #tpu.memory_space<vmem>>, vector<4x32x128xf32>
    %c0_2 = arith.constant 0 : index
    %c0_3 = arith.constant 0 : index
    %c0_4 = arith.constant 0 : index
    %1 = vector.load %arg2[%c0_2, %c0_3, %c0_4] : memref<4x32x1xf32, #tpu.memory_space<vmem>>, vector<4x32x1xf32>
    %2 = vector.broadcast %1 : vector<4x32x1xf32> to vector<4x32x128xf32>
    %3 = arith.mulf %0, %2 : vector<4x32x128xf32>
    %cst = arith.constant dense<0.000000e+00> : vector<32x128xf32>
    %4 = vector.multi_reduction <add>, %3, %cst [0] : vector<4x32x128xf32> to vector<32x128xf32>
    %cst_5 = arith.constant dense<0.000000e+00> : vector<32x1xf32>
    %5 = vector.multi_reduction <add>, %1, %cst_5 [0] : vector<4x32x1xf32> to vector<32x1xf32>
    %6 = vector.broadcast %5 : vector<32x1xf32> to vector<32x128xf32>
    %7 = arith.divf %4, %6 : vector<32x128xf32>
    %c0_6 = arith.constant 0 : index
    %c0_7 = arith.constant 0 : index
    %8 = vector.load %arg3[%c0_6, %c0_7] : memref<128x128xf32, #tpu.memory_space<vmem>>, vector<128x128xf32>
    %cst_8 = arith.constant dense<0.000000e+00> : vector<32x128xf32>
    %9 = tpu.matmul %7, %8, %cst_8 {dimension_numbers = #tpu.dot_dimension_numbers<[1], [0], [0], [1], [0, 0, 1, 1], [], []>} : vector<32x128xf32>, vector<128x128xf32>, vector<32x128xf32> -> vector<32x128xf32>
    %c0_9 = arith.constant 0 : index
    %c0_10 = arith.constant 0 : index
    %10 = vector.load %arg4[%c0_9, %c0_10] : memref<1x128xf32, #tpu.memory_space<vmem>>, vector<1x128xf32>
    %11 = vector.broadcast %10 : vector<1x128xf32> to vector<32x128xf32>
    %12 = arith.addf %9, %11 : vector<32x128xf32>
    %c0_11 = arith.constant 0 : index
    %c0_12 = arith.constant 0 : index
    %13 = vector.load %arg5[%c0_11, %c0_12] : memref<32x128xf32, #tpu.memory_space<vmem>>, vector<32x128xf32>
    tpu.vector_store %arg5[%c0_11, %c0_12], %12 {strides = array<i32>} : memref<32x128xf32, #tpu.memory_space<vmem>>, vector<32x128xf32>,
    return
  }
  func.func @transform_0(%arg0: i32) -> (i32, i32, i32) {
    %c0_i32 = arith.constant 0 : i32
    %c0_i32_0 = arith.constant 0 : i32
    %c0_i32_1 = arith.constant 0 : i32
    return %c0_i32, %arg0, %c0_i32_0 : i32, i32, i32
  }
  func.func @transform_1(%arg0: i32) -> (i32, i32, i32) {
    %c0_i32 = arith.constant 0 : i32
    %c0_i32_0 = arith.constant 0 : i32
    %c0_i32_1 = arith.constant 0 : i32
    return %c0_i32, %arg0, %c0_i32_0 : i32, i32, i32
  }
  func.func @transform_2(%arg0: i32) -> (i32, i32) {
    %c0_i32 = arith.constant 0 : i32
    %c0_i32_0 = arith.constant 0 : i32
    %c0_i32_1 = arith.constant 0 : i32
    return %c0_i32, %c0_i32_0 : i32, i32
  }
  func.func @transform_3(%arg0: i32) -> (i32, i32) {
    %c0_i32 = arith.constant 0 : i32
    %c0_i32_0 = arith.constant 0 : i32
    %c0_i32_1 = arith.constant 0 : i32
    return %c0_i32, %c0_i32_0 : i32, i32
  }
  func.func @transform_4(%arg0: i32) -> (i32, i32) {
    %c0_i32 = arith.constant 0 : i32
    %c0_i32_0 = arith.constant 0 : i32
    return %arg0, %c0_i32 : i32, i32
  }
}

</mosaic_0001>

<bundles_post_ra>
// kernel: tpu_custom_call.1
= control target key start
LH: loop header
LB: loop body
LE: loop exit
PB: predicated region body
PF: predicated region fallthrough
CT: control target
= control target key end

     0   :  { %9 = vsyncpa [#allocation5], 0  ;;  %s1443_s0 = inlined_call_operand.vmem [shape: f32[4,64,128], index: 0, kind: input, shape index: {}]   ;;  %s1444_s1 = inlined_call_operand.vmem [shape: f32[4,64,1], index: 1, kind: input, shape index: {}]   ;;  %s1445_s2 = inlined_call_operand.hbm [shape: f32[128,128], index: 2, kind: input, shape index: {}]   ;;  %s1446_s3 = inlined_call_operand.vmem [shape: f32[1,128], index: 3, kind: input, shape index: {}]   ;;  %s1447_s4 = inlined_call_operand.hbm [shape: f32[64,128], index: 4, kind: output, shape index: {}]  }
   0x1   :  { %10 = vsyncpa [#allocation6], 0 }
   0x2   :  { %12 = vsyncpa [#allocation6 + $0x1], 0  ;;  %s1168_s15 = smov 0   ;;  %s1170_s16 = smov 0  }
   0x3   :  { %s1172_s17 = smov 0   ;;  %s1174_s18 = smov 0  }
   0x4 LB: > { %s1189_s19 = sadd.s32 4294967295, %s1134_s18   ;;  %s845_s20 = sadd.s32 4294967294, %s1134_s18   ;;  %s1134_s18 = sphi %s1174_s18, %s1466_s18   ;;  %s1130_s17 = sphi %s1172_s17, %s1465_s17   ;;  %s1126_s16 = sphi %s1170_s16, %s1464_s16   ;;  %s1122_s15 = sphi %s1168_s15, %s1463_s15  }
   0x5   : > { %s1193_s21 = sadd.s32 1, %s1134_s18   ;;  %s25_s22 = sadd.s32 1, %s1130_s17 }
   0x6   : > { %s22_s23 = ssub.s32 %s1134_s18, %s1193_s21  ;;  %p32_p0 = scmp.ne.s32.totalorder %s1130_s17, %s1126_s16 }
   0x7   : > { %p23_p1 = scmp.eq.s32.totalorder %s22_s23, 0  ;;  %p33_p2 = scmp.eq.s32.totalorder %s1134_s18, 0 }
   0x8   : > { %p130_p3 = scmp.eq.s32.totalorder %s1189_s19, 1  ;;  %p135_p4 = scmp.ne.s32.totalorder %s1126_s16, %s1122_s15 }
   0x9   : > { %s1205_s24 = scalar_select %p23_p1, %s1130_s17, %s25_s22  }
   0xa   : > { %p1207_p5 = por %p33_p2, %p32_p0  ;;  %p1211_p6 = por %p130_p3, %p32_p0 }
   0xb   : > { %p136_p7 = scmp.eq.s32.totalorder %s845_s20, 1  ;;  %p846_p8 = scmp.ge.s32.totalorder %s1134_s18, 1 }
   0xc   : > { %s1451_s25 = scalar_select %p1207_p5, 1, 0 }
   0xd   : > { %s1452_s26 = scalar_select %p1211_p6, 1, 0 }
   0xe   : > { %p143_p9 = scmp.lt.s32.totalorder %s1134_s18, 3  ;;  %p1217_p10 = por %p136_p7, %p135_p4 }
   0xf   : > { %p1448_p11 = scmp.eq.s32.totalorder %s1189_s19, 0  ;;  %s1136_s29 = smov [#allocation4]  }
  0x10   : > { %s1453_s27 = scalar_select %p1217_p10, 1, 0 }
  0x11   : > { %p1222_p12 = pnand %p846_p8, %p143_p9  ;;  %s155_s30 = sshll.u32 %s1136_s29, 4  ;;  %s156_s30 = int_to_ptr.vmem [resolvable:$true] %s155_s30 }
  0x12   : > { %s1040_s8 = scalar_lea.hbm %s1445_s2, 2048 }
  0x13   : > { %s1454_s28 = scalar_select %p1222_p12, 1, 0 }
  0x14   : > { %p981_p13 = pneg %p1222_p12  ;;  %p1041_p1 = scmp.ne.s32.totalorder %s1445_s2, %s1040_s8 }
  0x15   : > { %p1047_p7 = scmp.lt.u32.totalorder %s1040_s8, %s1445_s2 }
  0x16   : > { %p1230_p0 = pnand %p1448_p11, %p981_p13 }
  0x18   : > { %p1042_p2 = pneg %p1230_p0 }
  0x1a   : > { %p1043_p3 = pnand %p1042_p2, %p1041_p1 }
  0x1c   : > { %p1044_p4 = pneg %p1043_p3 }
  0x1e   : > { %p1049_p8 = pnand %p1047_p7, %p1044_p4 }
  0x20   : > { %1052 = shalt.err (!%p1049_p8)
}
  0x21   : > { %s1053_s13 = scalar_lea.vmem %s156_s30, 2048  ;;  %p1061_p10 = scmp.lt.s32.totalorder %s156_s30, %s156_s30 }
  0x22   : > { %p1054_p9 = scmp.ne.s32.totalorder %s156_s30, %s1053_s13  ;;  %p1062_p6 = scmp.lt.s32.totalorder %s1053_s13, %s1053_s13 }
  0x24   : > { %p1056_p13 = pnand %p1054_p9, %p1042_p2  ;;  %p1063_p12 = por %p1062_p6, %p1061_p10 }
  0x26   : > { %p1057_p11 = pneg %p1056_p13 }
  0x28   : > { %p1064_p5 = pnand %p1063_p12, %p1057_p11 }
  0x2a   : > { %1067 = shalt.err (!%p1064_p5)
}
  0x2b   : > { %s1137_s14 = smov 128   ;;  %s1138_s20 = smov 8  }
  0x2c   : > { %984 = dma.hbm_to_vmem [thread:$0]  (!%p1230_p0), %s1445_s2, 2048, %s156_s30, [#allocation5], %s1137_s14, %s1137_s14, %s1138_s20  }
  0x2d   : > { %p848_p1 = scmp.ge.s32.totalorder %s1134_s18, 2 }
  0x2e   : > { %p1456_p2 = scmp.ne.s32.totalorder (!%p848_p1), %s1451_s25, 0 }
  0x2f   : > { %168 = sbr.rel (%p848_p1) target bundleno = 79 (0x4f), region = 24 }
  0x36   : > { %171 = sbr.rel (!%p1456_p2) target bundleno = 66 (0x42), region = 28  ;;  %s173_s29 = sand.u32 (%p1456_p2), 1, %s1130_s17  }
  0x37   : > { %s866_s6 = sshll.u32 (%p1456_p2), %s1134_s18, 5  ;;  %s849_s7 = sshll.u32 (%p1456_p2), %s173_s29, 7 }
  0x38   : > { %s1260_s5 = scalar_lea.vmem (%p1456_p2), %s1443_s0, %s866_s6  ;;  %s175_s30 = scalar_lea.vmem (%p1456_p2), [#allocation2], %s849_s7 }
  0x39   : > { %v236_v0 = vld [vmem:[%s1260_s5] sm:$0xff] (%p1456_p2)  ;;  %v238_v1 = vld [vmem:[%s1260_s5 + $0x8] sm:$0xff] (%p1456_p2)  ;;  %v240_v2 = vld [vmem:[%s1260_s5 + $0x10] sm:$0xff] (%p1456_p2) }
  0x3a   : > { %237 = vst [vmem:[%s175_s30] sm:$0xff] (%p1456_p2), %v236_v0  ;;  %239 = vst [vmem:[%s175_s30 + $0x8] sm:$0xff] (%p1456_p2), %v238_v1  ;;  %v242_v3 = vld [vmem:[%s1260_s5 + $0x18] sm:$0xff] (%p1456_p2)  ;;  %v244_v4 = vld [vmem:[%s1260_s5 + $0x40] sm:$0xff] (%p1456_p2) }
  0x3b   : > { %241 = vst [vmem:[%s175_s30 + $0x10] sm:$0xff] (%p1456_p2), %v240_v2  ;;  %v246_v5 = vld [vmem:[%s1260_s5 + $0x48] sm:$0xff] (%p1456_p2)  ;;  %243 = vst [vmem:[%s175_s30 + $0x18] sm:$0xff] (%p1456_p2), %v242_v3  ;;  %v248_v6 = vld [vmem:[%s1260_s5 + $0x50] sm:$0xff] (%p1456_p2) }
  0x3c   : > { %245 = vst [vmem:[%s175_s30 + $0x20] sm:$0xff] (%p1456_p2), %v244_v4  ;;  %247 = vst [vmem:[%s175_s30 + $0x28] sm:$0xff] (%p1456_p2), %v246_v5  ;;  %v250_v7 = vld [vmem:[%s1260_s5 + $0x58] sm:$0xff] (%p1456_p2)  ;;  %v252_v8 = vld [vmem:[%s1260_s5 + $0x80] sm:$0xff] (%p1456_p2) }
  0x3d   : > { %249 = vst [vmem:[%s175_s30 + $0x30] sm:$0xff] %v248_v6  ;;  %251 = vst [vmem:[%s175_s30 + $0x38] sm:$0xff] %v250_v7  ;;  %v254_v9 = vld [vmem:[%s1260_s5 + $0x88] sm:$0xff]  ;;  %v256_v10 = vld [vmem:[%s1260_s5 + $0x90] sm:$0xff] }
  0x3e   : > { %253 = vst [vmem:[%s175_s30 + $0x40] sm:$0xff] %v252_v8  ;;  %v258_v11 = vld [vmem:[%s1260_s5 + $0x98] sm:$0xff]  ;;  %255 = vst [vmem:[%s175_s30 + $0x48] sm:$0xff] %v254_v9  ;;  %v260_v12 = vld [vmem:[%s1260_s5 + $0xc0] sm:$0xff] }
  0x3f   : > { %257 = vst [vmem:[%s175_s30 + $0x50] sm:$0xff] %v256_v10  ;;  %259 = vst [vmem:[%s175_s30 + $0x58] sm:$0xff] %v258_v11  ;;  %v262_v13 = vld [vmem:[%s1260_s5 + $0xc8] sm:$0xff]  ;;  %v264_v14 = vld [vmem:[%s1260_s5 + $0xd0] sm:$0xff] }
  0x40   : > { %261 = vst [vmem:[%s175_s30 + $0x60] sm:$0xff] %v260_v12  ;;  %263 = vst [vmem:[%s175_s30 + $0x68] sm:$0xff] %v262_v13  ;;  %v266_v15 = vld [vmem:[%s1260_s5 + $0xd8] sm:$0xff] }
  0x41   : > { %265 = vst [vmem:[%s175_s30 + $0x70] sm:$0xff] %v264_v14  ;;  %267 = vst [vmem:[%s175_s30 + $0x78] sm:$0xff] %v266_v15 }
  0x42 PF: > { %p1457_p5 = scmp.ne.s32.totalorder %s1451_s25, 0 }
  0x43   : > { %s275_s10 = sand.u32 (%p1457_p5), 1, %s1130_s17   ;;  %s867_s11 = sshll.u32 (%p1457_p5), %s1134_s18, 5 }
  0x44   : > { %273 = sbr.rel (!%p1457_p5) target bundleno = 79 (0x4f), region = 66  ;;  %s852_s12 = sshll.u32 (%p1457_p5), %s275_s10, 7 }
  0x45   : > { %s1285_s20 = scalar_lea.vmem (%p1457_p5), %s1444_s1, %s867_s11  ;;  %s277_s25 = scalar_lea.vmem (%p1457_p5), [#allocation3], %s852_s12 }
  0x46   : > { %v338_v16 = vld [vmem:[%s1285_s20] sm:$0xff] (%p1457_p5)  ;;  %v340_v17 = vld [vmem:[%s1285_s20 + $0x8] sm:$0xff] (%p1457_p5)  ;;  %v342_v18 = vld [vmem:[%s1285_s20 + $0x10] sm:$0xff] (%p1457_p5) }
  0x47   : > { %339 = vst [vmem:[%s277_s25] sm:$0xff] (%p1457_p5), %v338_v16  ;;  %341 = vst [vmem:[%s277_s25 + $0x8] sm:$0xff] (%p1457_p5), %v340_v17  ;;  %v344_v19 = vld [vmem:[%s1285_s20 + $0x18] sm:$0xff] (%p1457_p5)  ;;  %v346_v20 = vld [vmem:[%s1285_s20 + $0x40] sm:$0xff] (%p1457_p5) }
  0x48   : > { %343 = vst [vmem:[%s277_s25 + $0x10] sm:$0xff] (%p1457_p5), %v342_v18  ;;  %v348_v21 = vld [vmem:[%s1285_s20 + $0x48] sm:$0xff] (%p1457_p5)  ;;  %345 = vst [vmem:[%s277_s25 + $0x18] sm:$0xff] (%p1457_p5), %v344_v19  ;;  %v350_v22 = vld [vmem:[%s1285_s20 + $0x50] sm:$0xff] (%p1457_p5) }
  0x49   : > { %347 = vst [vmem:[%s277_s25 + $0x20] sm:$0xff] (%p1457_p5), %v346_v20  ;;  %349 = vst [vmem:[%s277_s25 + $0x28] sm:$0xff] (%p1457_p5), %v348_v21  ;;  %v352_v23 = vld [vmem:[%s1285_s20 + $0x58] sm:$0xff] (%p1457_p5)  ;;  %v354_v24 = vld [vmem:[%s1285_s20 + $0x80] sm:$0xff] (%p1457_p5) }
  0x4a   : > { %351 = vst [vmem:[%s277_s25 + $0x30] sm:$0xff] (%p1457_p5), %v350_v22  ;;  %353 = vst [vmem:[%s277_s25 + $0x38] sm:$0xff] (%p1457_p5), %v352_v23  ;;  %v356_v25 = vld [vmem:[%s1285_s20 + $0x88] sm:$0xff] (%p1457_p5)  ;;  %v358_v26 = vld [vmem:[%s1285_s20 + $0x90] sm:$0xff] (%p1457_p5) }
  0x4b   : > { %355 = vst [vmem:[%s277_s25 + $0x40] sm:$0xff] %v354_v24  ;;  %v360_v27 = vld [vmem:[%s1285_s20 + $0x98] sm:$0xff]  ;;  %357 = vst [vmem:[%s277_s25 + $0x48] sm:$0xff] %v356_v25  ;;  %v362_v28 = vld [vmem:[%s1285_s20 + $0xc0] sm:$0xff] }
  0x4c   : > { %359 = vst [vmem:[%s277_s25 + $0x50] sm:$0xff] %v358_v26  ;;  %361 = vst [vmem:[%s277_s25 + $0x58] sm:$0xff] %v360_v27  ;;  %v364_v29 = vld [vmem:[%s1285_s20 + $0xc8] sm:$0xff]  ;;  %v366_v30 = vld [vmem:[%s1285_s20 + $0xd0] sm:$0xff] }
  0x4d   : > { %363 = vst [vmem:[%s277_s25 + $0x60] sm:$0xff] %v362_v28  ;;  %365 = vst [vmem:[%s277_s25 + $0x68] sm:$0xff] %v364_v29  ;;  %v368_v31 = vld [vmem:[%s1285_s20 + $0xd8] sm:$0xff] }
  0x4e   : > { %367 = vst [vmem:[%s277_s25 + $0x70] sm:$0xff] %v366_v30  ;;  %369 = vst [vmem:[%s277_s25 + $0x78] sm:$0xff] %v368_v31 }
  0x4f PF: > { %p1458_p6 = scmp.ne.s32.totalorder %s1454_s28, 0 }
  0x50   : > { %s1306_s22 = sand.u32 (!%p1458_p6), 1, %s1126_s16   ;;  %p1459_p10 = scmp.eq.s32.totalorder (!%p1458_p6), %s1189_s19, 0 }
  0x51   : > { %378 = sbr.rel (%p1458_p6) target bundleno = 492 (0x1ec), region = 104  ;;  %s856_s23 = sshll.u32 (!%p1458_p6), %s1306_s22, 7 }
  0x52   : > { %s1309_s29 = scalar_lea.vmem (!%p1458_p6), [#allocation2], %s856_s23  ;;  %s1311_s6 = scalar_lea.vmem (!%p1458_p6), [#allocation3], %s856_s23 }
  0x58   : > { %1113 = dma.done.wait (%p1459_p10), [#allocation5], 2048   ;;  %p1460_p11 = pmov %p1459_p10 }
  0x59   : > { %v1139_v32 = vmov 0   ;;  %vm564_vm0 = vcmask 7168   ;;  %v442_v33 = vld [vmem:[%s1311_s6 + $0x10] sm:$0xff]  ;;  %v440_v34 = vld [vmem:[%s1311_s6] sm:$0xff]  ;;  %v441_v46 = vld [vmem:[%s1311_s6 + $0x8] sm:$0xff]  ;;  %s859_s28 = sshll.u32 %s1306_s22, 5 }
  0x5a   : > { %1115 = vsyncadd (%p1460_p11), [#allocation5], 4294965248  ;;  %1031 = vset.pattern.permute.xlu1 %v1139_v32  ;;  %1030 = vset.pattern.permute.xlu0 %v1139_v32  ;;  %v446_v35 = vld [vmem:[%s1311_s6 + $0x30] sm:$0xff]  ;;  %v579_v36 = vsel %vm564_vm0, %v442_v33, 0.0  ;;  %v565_v37 = vsel %vm564_vm0, %v440_v34, 0.0  ;;  %v444_v40 = vld [vmem:[%s1311_s6 + $0x20] sm:$0xff] }
  0x5b   : > { %468 = vperm.xlu1 %1031, %v442_v33   ;;  %458 = vperm.xlu0 %1030, %v440_v34   ;;  %v1323_v38 = vld [vmem:[%s1311_s6 + $0x50] sm:$0xff]  ;;  %v580_v39 = vsel %vm564_vm0, %v446_v35, 0.0  ;;  %v1328_v41 = vld [vmem:[%s1311_s6 + $0x40] sm:$0xff]  ;;  %v566_v44 = vsel %vm564_vm0, %v444_v40, 0.0  ;;  %v445_v47 = vld [vmem:[%s1311_s6 + $0x28] sm:$0xff]  ;;  %v572_v51 = vsel %vm564_vm0, %v441_v46, 0.0 }
  0x5c   : > { %v582_v42 = vsel %vm564_vm0, %v1323_v38, 0.0  ;;  %v581_v43 = vadd.f32 %v580_v39, %v579_v36  ;;  %v568_v45 = vsel %vm564_vm0, %v1328_v41, 0.0  ;;  %v1338_v48 = vld [vmem:[%s1311_s6 + $0x48] sm:$0xff]  ;;  %v567_v49 = vadd.f32 %v566_v44, %v565_v37  ;;  %v1348_v54 = vld [vmem:[%s1311_s6 + $0x60] sm:$0xff]  ;;  %v443_v55 = vld [vmem:[%s1311_s6 + $0x18] sm:$0xff]  ;;  %s420_s9 = scalar_lea.vmem [#allocation7], %s859_s28 }
  0x5d   : > { %v1341_v50 = vld [vmem:[%s1311_s6 + $0x68] sm:$0xff]  ;;  %v573_v52 = vsel %vm564_vm0, %v445_v47, 0.0  ;;  %v575_v53 = vsel %vm564_vm0, %v1338_v48, 0.0  ;;  %v570_v59 = vsel %vm564_vm0, %v1348_v54, 0.0  ;;  %v447_v60 = vld [vmem:[%s1311_s6 + $0x38] sm:$0xff]  ;;  %v586_v0 = vsel %vm564_vm0, %v443_v55, 0.0 }
  0x5e   : > { %v583_v56 = vadd.f32 %v582_v42, %v581_v43  ;;  %v574_v57 = vadd.f32 %v573_v52, %v572_v51  ;;  %v577_v58 = vsel %vm564_vm0, %v1341_v50, 0.0  ;;  %v451_v61 = vld [vmem:[%s1311_s6 + $0x58] sm:$0xff]  ;;  %v569_v63 = vadd.f32 %v568_v45, %v567_v49  ;;  %v454_v3 = vld [vmem:[%s1311_s6 + $0x70] sm:$0xff]  ;;  %v621_v12 = vld [vmem:[#allocation4] sm:$0xff]  ;;  %s747_s5 = sshll.u32 %s420_s9, 4  ;;  %s868_s30 = sshll.u32 %s1189_s19, 9  ;;  %s1394_s5 = int_to_ptr.vmem [resolvable:$true] %s747_s5 }
  0x5f   : > { %v1358_v62 = vld [vmem:[%s1311_s6 + $0x78] sm:$0xff]  ;;  %488 = vperm.xlu1 %1031, %v446_v35   ;;  %478 = vperm.xlu0 %1030, %v444_v40   ;;  %v587_v1 = vsel %vm564_vm0, %v447_v60, 0.0  ;;  %v589_v2 = vsel %vm564_vm0, %v451_v61, 0.0  ;;  %v584_v6 = vsel %vm564_vm0, %v454_v3, 0.0  ;;  %v622_v13 = vld [vmem:[#allocation4 + $0x8] sm:$0xff]  ;;  %v623_v16 = vld [vmem:[#allocation4 + $0x10] sm:$0xff]  ;;  %s1399_s12 = scalar_lea.hbm %s1447_s4, %s868_s30 }
  0x60   : > { %v576_v4 = vadd.f32 %v575_v53, %v574_v57  ;;  %v588_v5 = vadd.f32 %v587_v1, %v586_v0  ;;  %v571_v7 = vadd.f32 %v570_v59, %v569_v63  ;;  %v591_v8 = vsel %vm564_vm0, %v1358_v62, 0.0  ;;  %v624_v17 = vld [vmem:[#allocation4 + $0x18] sm:$0xff]  ;;  %v625_v19 = vld [vmem:[#allocation4 + $0x20] sm:$0xff]  ;;  %v626_v20 = vld [vmem:[#allocation4 + $0x28] sm:$0xff]  ;;  %s734_s19 = scalar_lea.sflag [#allocation6], %s1306_s22  ;;  %s1068_s13 = scalar_lea.vmem %s1394_s5, 512 }
  0x61   : > { %v585_v11 = vadd.f32 %v584_v6, %v583_v56  ;;  %v927_v15 = vpack.c.bf16 %v622_v13, %v621_v12  ;;  %v931_v18 = vpack.c.bf16 %v624_v17, %v623_v16  ;;  %v935_v21 = vpack.c.bf16 %v626_v20, %v625_v19  ;;  %v627_v22 = vld [vmem:[#allocation4 + $0x30] sm:$0xff]  ;;  %v628_v23 = vld [vmem:[#allocation4 + $0x38] sm:$0xff]  ;;  %v629_v25 = vld [vmem:[#allocation4 + $0x40] sm:$0xff]  ;;  %p1069_p12 = scmp.ne.s32.totalorder %s1394_s5, %s1068_s13  ;;  %p1461_p0 = scmp.ne.s32.totalorder %s1452_s26, 0 }
  0x62   : > { %v578_v9 = vadd.f32 %v577_v58, %v576_v4  ;;  %v590_v10 = vadd.f32 %v589_v2, %v588_v5  ;;  %v939_v24 = vpack.c.bf16 %v628_v23, %v627_v22  ;;  %v630_v26 = vld [vmem:[#allocation4 + $0x48] sm:$0xff]  ;;  %v631_v28 = vld [vmem:[#allocation4 + $0x50] sm:$0xff]  ;;  %v632_v29 = vld [vmem:[#allocation4 + $0x58] sm:$0xff]  ;;  %s1140_s14 = smov [#allocation7]  }
  0x63   : > { %595 = vperm.xlu0 %1030, %v571_v7   ;;  %928 = vmatprep.subr.bf16.mxu0 %v927_v15  ;;  %v943_v27 = vpack.c.bf16 %v630_v26, %v629_v25  ;;  %v947_v30 = vpack.c.bf16 %v632_v29, %v631_v28  ;;  %v633_v31 = vld [vmem:[#allocation4 + $0x60] sm:$0xff]  ;;  %v634_v32 = vld [vmem:[#allocation4 + $0x68] sm:$0xff]  ;;  %v635_v34 = vld [vmem:[#allocation4 + $0x70] sm:$0xff]  ;;  %p1070_p3 = pnand %p1069_p12, %p1461_p0  ;;  %s1072_s20 = sshll.u32 %s1140_s14, 4  ;;  %s1073_s20 = int_to_ptr.vmem [resolvable:$false] %s1072_s20 }
  0x64   : > { %600 = vperm.xlu1 %1031, %v578_v9   ;;  %v592_v14 = vadd.f32 %v591_v8, %v590_v10  ;;  %959 = vmatprep.subr.bf16.mxu1 %v927_v15  ;;  %v951_v33 = vpack.c.bf16 %v634_v32, %v633_v31  ;;  %v636_v35 = vld [vmem:[#allocation4 + $0x78] sm:$0xff]  ;;  %v428_v49 = vld [vmem:[%s1309_s29 + $0x20] sm:$0xff]  ;;  %v430_v51 = vld [vmem:[%s1309_s29 + $0x30] sm:$0xff]  ;;  %s1074_s25 = scalar_lea.vmem %s1073_s20, 1024  ;;  %p1075_p7 = scmp.lt.s32.totalorder %s1394_s5, %s1073_s20 }
  0x65   : > { %930 = vmatpush3.bf16.msra.mxu0 %v927_v15  ;;  %967 = vmatpush3.bf16.msra.mxu1 %v927_v15  ;;  %v955_v36 = vpack.c.bf16 %v636_v35, %v635_v34  ;;  %v424_v53 = vld [vmem:[%s1309_s29] sm:$0xff]  ;;  %v434_v57 = vld [vmem:[%s1309_s29 + $0x50] sm:$0xff]  ;;  %v429_v59 = vld [vmem:[%s1309_s29 + $0x28] sm:$0xff]  ;;  %p1071_p4 = pneg %p1070_p3  ;;  %p1076_p8 = scmp.lt.s32.totalorder %s1074_s25, %s1068_s13 }
  0x66   : > { %932 = vmatprep.subr.bf16.mxu0 %v931_v18  ;;  %960 = vmatprep.subr.bf16.mxu1 %v931_v18  ;;  %v425_v2 = vld [vmem:[%s1309_s29 + $0x8] sm:$0xff]  ;;  %v436_v5 = vld [vmem:[%s1309_s29 + $0x60] sm:$0xff]  ;;  %v427_v7 = vld [vmem:[%s1309_s29 + $0x18] sm:$0xff] }
  0x67   : > { %605 = vperm.xlu0 %1030, %v585_v11   ;;  %v433_v4 = vld [vmem:[%s1309_s29 + $0x48] sm:$0xff]  ;;  %v435_v9 = vld [vmem:[%s1309_s29 + $0x58] sm:$0xff]  ;;  %v438_v10 = vld [vmem:[%s1309_s29 + $0x70] sm:$0xff]  ;;  %p1077_p9 = por %p1076_p8, %p1075_p7 }
  0x68   : > { %610 = vperm.xlu1 %1031, %v592_v14   ;;  %v437_v23 = vld [vmem:[%s1309_s29 + $0x68] sm:$0xff]  ;;  %v439_v25 = vld [vmem:[%s1309_s29 + $0x78] sm:$0xff] }
  0x69   : > { %934 = vmatpush3.bf16.msra.mxu0 %v931_v18  ;;  %968 = vmatpush3.bf16.msra.mxu1 %v931_v18  ;;  %p1078_p13 = pnand %p1077_p9, %p1071_p4 }
  0x6a   : > { %936 = vmatprep.subr.bf16.mxu0 %v935_v21  ;;  %961 = vmatprep.subr.bf16.mxu1 %v935_v21 }
  0x6b   : > { %463 = vperm.xlu0 %1030, %v441_v46  }
  0x6c   : > { %473 = vperm.xlu1 %1031, %v443_v55   ;;  %v426_v55 = vld [vmem:[%s1309_s29 + $0x10] sm:$0xff] }
  0x6d   : > { %938 = vmatpush3.bf16.msra.mxu0 %v935_v21  ;;  %969 = vmatpush3.bf16.msra.mxu1 %v935_v21 }
  0x6e   : > { %940 = vmatprep.subr.bf16.mxu0 %v939_v24  ;;  %962 = vmatprep.subr.bf16.mxu1 %v939_v24 }
  0x6f   : > { %483 = vperm.xlu0 %1030, %v445_v47  }
  0x70   : > { %493 = vperm.xlu1 %1031, %v447_v60  }
  0x71   : > { %942 = vmatpush3.bf16.msra.mxu0 %v939_v24  ;;  %970 = vmatpush3.bf16.msra.mxu1 %v939_v24 }
  0x72   : > { %944 = vmatprep.subr.bf16.mxu0 %v943_v27  ;;  %963 = vmatprep.subr.bf16.mxu1 %v943_v27 }
  0x73   : > { %498 = vperm.xlu0 %1030, %v1328_v41  }
  0x74   : > { %508 = vperm.xlu1 %1031, %v1323_v38  }
  0x75   : > { %946 = vmatpush3.bf16.msra.mxu0 %v943_v27  ;;  %971 = vmatpush3.bf16.msra.mxu1 %v943_v27 }
  0x76   : > { %948 = vmatprep.subr.bf16.mxu0 %v947_v30  ;;  %964 = vmatprep.subr.bf16.mxu1 %v947_v30 }
  0x77   : > { %503 = vperm.xlu0 %1030, %v1338_v48  }
  0x78   : > { %513 = vperm.xlu1 %1031, %v451_v61  }
  0x79   : > { %950 = vmatpush3.bf16.msra.mxu0 %v947_v30  ;;  %972 = vmatpush3.bf16.msra.mxu1 %v947_v30 }
  0x7a   : > { %952 = vmatprep.subr.bf16.mxu0 %v951_v33  ;;  %965 = vmatprep.subr.bf16.mxu1 %v951_v33 }
  0x7b   : > { %518 = vperm.xlu0 %1030, %v1348_v54   ;;  %v432_v54 = vld [vmem:[%s1309_s29 + $0x40] sm:$0xff] }
  0x7c   : > { %528 = vperm.xlu1 %1031, %v454_v3  }
  0x7d   : > { %954 = vmatpush3.bf16.msra.mxu0 %v951_v33  ;;  %973 = vmatpush3.bf16.msra.mxu1 %v951_v33 }
  0x7e   : > { %956 = vmatprep.subr.bf16.mxu0 %v955_v36  ;;  %966 = vmatprep.subr.bf16.mxu1 %v955_v36 }
  0x7f   : > { %523 = vperm.xlu0 %1030, %v1341_v50  }
  0x80   : > { %533 = vperm.xlu1 %1031, %v1358_v62   ;;  %v431_v62 = vld [vmem:[%s1309_s29 + $0x38] sm:$0xff] }
  0x81   : > { %958 = vmatpush3.bf16.msra.mxu0 %v955_v36  ;;  %974 = vmatpush3.bf16.msra.mxu1 %v955_v36 }
  0xda   : > { %v469_v37 = vpop.permute.xlu1 %468  ;;  %v459_v38 = vpop.permute.xlu0 %458 }
  0xdb   : > { %v536_v61 = vmul.f32 %v459_v38, %v424_v53  ;;  %v538_v1 = vmul.f32 %v469_v37, %v426_v55 }
  0xde   : > { %v489_v39 = vpop.permute.xlu1 %488  ;;  %v479_v40 = vpop.permute.xlu0 %478 }
  0xdf   : > { %v540_v56 = vmul.f32 %v479_v40, %v428_v49  ;;  %v542_v58 = vmul.f32 %v489_v39, %v430_v51 }
  0xe1   : > { %v552_v6 = vadd.f32 %v540_v56, %v536_v61  ;;  %v558_v11 = vadd.f32 %v542_v58, %v538_v1 }
  0xe2   : > { %v596_v41 = vpop.permute.xlu0 %595 }
  0xe3   : > { %v601_v42 = vpop.permute.xlu1 %600  ;;  %1032 = vrcp.f32 %v596_v41 }
  0xe6   : > { %v606_v43 = vpop.permute.xlu0 %605 }
  0xe7   : > { %v611_v44 = vpop.permute.xlu1 %610  ;;  %1034 = vrcp.f32 %v606_v43 }
  0xe8   : > { %1036 = vrcp.f32 %v601_v42 }
  0xe9   : > { %1038 = vrcp.f32 %v611_v44 }
  0xea   : > { %v464_v45 = vpop.permute.xlu0 %463 }
  0xeb   : > { %v474_v46 = vpop.permute.xlu1 %473  ;;  %v537_v14 = vmul.f32 %v464_v45, %v425_v2  ;;  %v860_v45 = vld [vmem:[%s1446_s3] ss:$0 sm:$0xff] }
  0xec   : > { %v539_v19 = vmul.f32 %v474_v46, %v427_v7 }
  0xed   : > { %v1033_v27 = vpop.eup %1032 }
  0xee   : > { %v484_v47 = vpop.permute.xlu0 %483 }
  0xef   : > { %v494_v48 = vpop.permute.xlu1 %493  ;;  %v541_v8 = vmul.f32 %v484_v47, %v429_v59 }
  0xf0   : > { %v543_v12 = vmul.f32 %v494_v48, %v431_v62 }
  0xf1   : > { %v555_v24 = vadd.f32 %v541_v8, %v537_v14  ;;  %v1035_v31 = vpop.eup %1034 }
  0xf2   : > { %v499_v50 = vpop.permute.xlu0 %498  ;;  %v561_v28 = vadd.f32 %v543_v12, %v539_v19  ;;  %v1037_v40 = vpop.eup %1036 }
  0xf3   : > { %v509_v52 = vpop.permute.xlu1 %508  ;;  %v544_v63 = vmul.f32 %v499_v50, %v432_v54  ;;  %v1039_v42 = vpop.eup %1038 }
  0xf4   : > { %v546_v3 = vmul.f32 %v509_v52, %v434_v57 }
  0xf5   : > { %v553_v15 = vadd.f32 %v552_v6, %v544_v63 }
  0xf6   : > { %v504_v60 = vpop.permute.xlu0 %503  ;;  %v559_v20 = vadd.f32 %v558_v11, %v546_v3 }
  0xf7   : > { %v514_v0 = vpop.permute.xlu1 %513  ;;  %v545_v16 = vmul.f32 %v504_v60, %v433_v4 }
  0xf8   : > { %v547_v21 = vmul.f32 %v514_v0, %v435_v9 }
  0xf9   : > { %v556_v32 = vadd.f32 %v555_v24, %v545_v16 }
  0xfa   : > { %v519_v13 = vpop.permute.xlu0 %518  ;;  %v562_v36 = vadd.f32 %v561_v28, %v547_v21 }
  0xfb   : > { %v529_v17 = vpop.permute.xlu1 %528  ;;  %v548_v18 = vmul.f32 %v519_v13, %v436_v5 }
  0xfc   : > { %v550_v22 = vmul.f32 %v529_v17, %v438_v10 }
  0xfd   : > { %v554_v26 = vadd.f32 %v553_v15, %v548_v18 }
  0xfe   : > { %v524_v29 = vpop.permute.xlu0 %523  ;;  %v560_v30 = vadd.f32 %v559_v20, %v550_v22 }
  0xff   : > { %v534_v33 = vpop.permute.xlu1 %533  ;;  %v549_v34 = vmul.f32 %v524_v29, %v437_v23  ;;  %v614_v35 = vmul.f32 %v1033_v27, %v554_v26 }
 0x100   : > { %v551_v37 = vmul.f32 %v534_v33, %v439_v25  ;;  %v618_v38 = vmul.f32 %v1035_v31, %v560_v30 }
 0x101   : > { %v557_v39 = vadd.f32 %v556_v32, %v549_v34  ;;  %921 = vmatprep.mubr.f32.mxu0 %v614_v35 }
 0x102   : > { %v563_v41 = vadd.f32 %v562_v36, %v551_v37  ;;  %924 = vmatprep.mubr.f32.mxu1 %v618_v38 }
 0x103   : > { %v616_v43 = vmul.f32 %v1037_v40, %v557_v39 }
 0x104   : > { %v620_v44 = vmul.f32 %v1039_v42, %v563_v41 }
 0x105   : > { %922 = vmatmul.mubr.f32.vlgmr.msra.gmra.mrb[0].mxu0 %v616_v43 }
 0x106   : > { %925 = vmatmul.mubr.f32.vlgmr.msra.gmra.mrb[0].mxu1 %v620_v44 }
 0x1d8   : > { %v923_v46 = vpop.f32.mrb[0].mxu0 }
 0x1d9   : > { %v716_v47 = vadd.f32 %v923_v46, %v860_v45  ;;  %v926_v48 = vpop.f32.mrb[0].mxu1  ;;  %v710_v49 = vpop.f32.mrb[1].mxu0 }
 0x1da   : > { %v726_v50 = vadd.f32 %v926_v48, %v860_v45  ;;  %v711_v51 = vadd.f32 %v860_v45, %v710_v49  ;;  %v720_v52 = vpop.f32.mrb[1].mxu1 }
 0x1db   : > { %730 = vst [vmem:[%s420_s9 + $0x8] sm:$0xff] %v716_v47  ;;  %v721_v53 = vadd.f32 %v860_v45, %v720_v52 }
 0x1dc   : > { %732 = vst [vmem:[%s420_s9 + $0x18] sm:$0xff] %v726_v50  ;;  %729 = vst [vmem:[%s420_s9] sm:$0xff] %v711_v51 }
 0x1dd   : > { %731 = vst [vmem:[%s420_s9 + $0x10] sm:$0xff] %v721_v53 }
 0x1de   : > { %1081 = shalt.err (!%p1078_p13)
}
 0x1df   : > { %s1082_s23 = scalar_lea.hbm %s1399_s12, 512  ;;  %s1086_s28 = scalar_lea.hbm %s1447_s4, 1024 }
 0x1e0   : > { %p1083_p2 = scmp.ne.s32.totalorder %s1399_s12, %s1082_s23  ;;  %p1087_p10 = scmp.lt.u32.totalorder %s1399_s12, %s1447_s4 }
 0x1e1   : > { %p1088_p11 = scmp.lt.u32.totalorder %s1086_s28, %s1082_s23  ;;  %p1090_p3 = scmp.lt.u32.totalorder %s1082_s23, %s1399_s12 }
 0x1e2   : > { %p1084_p5 = pnand %p1083_p2, %p1461_p0 }
 0x1e3   : > { %p1089_p12 = por %p1088_p11, %p1087_p10 }
 0x1e4   : > { %p1085_p6 = pneg %p1084_p5 }
 0x1e5   : > { %p1091_p4 = por %p1090_p3, %p1089_p12 }
 0x1e7   : > { %p1092_p7 = pnand %p1091_p4, %p1085_p6 }
 0x1e9   : > { %1095 = shalt.err (!%p1092_p7)
}
 0x1ea   : > { %s1141_s9 = smov 128   ;;  %s1142_s30 = smov 8  }
 0x1eb   : > { %979 = dma.vmem_to_hbm [thread:$0]  (%p1461_p0), %s1394_s5, 512, %s1399_s12, %s734_s19, %s1141_s9, %s1141_s9, %s1142_s30  }
 0x1ec PF: > { %s762_s10 = sand.u32 1, %s1122_s15   ;;  %p1462_p8 = scmp.ne.s32.totalorder %s1453_s27, 0 }
 0x1ed   : > { %s763_s11 = scalar_lea.sflag [#allocation6], %s762_s10 }
 0x1ee   : > { %p986_p9 = pnand %p848_p1, %p1462_p8 }
 0x1f0   : > { %1117 = dma.done.wait (!%p986_p9), %s763_s11, 512  }
 0x1f1   : > { %1119 = vsyncadd (!%p986_p9), %s763_s11, 4294966784  ;;  %p15_p13 = scmp.ge.s32.totalorder %s1193_s21, 4   ;;  %s1463_s15 = smov %s1126_s16 }
 0x1f2   : > { %s1464_s16 = smov %s1130_s17  ;;  %s1465_s17 = smov %s1205_s24 }
 0x1f3   : > { %s1466_s18 = smov %s1193_s21  ;;  %17 = sbr.rel (!%p15_p13) target bundleno = 4 (0x4), region = 165 }
 0x1fa   :  { %768 = vsyncpa [#allocation5], 1 }
 0x1fb   :  { %770 = vsyncpa [#allocation5 + $0x1], 1 }
 0x1fc   :  { %771 = vsyncpa [#allocation6], 1 }
 0x1fd   :  { %773 = vsyncpa [#allocation6 + $0x1], 1 }

</bundles_post_ra>
